<compile_context>
chip_gen: v6e
topology: v6e:2x2x1
jax: 0.10.0
libtpu: 0.0.40
codegen_flags: <defaults>
</compile_context>

<pallas_src>
import math
import jax
import jax.numpy as jnp
from jax.experimental import pallas as pl
from jax.experimental.pallas import tpu as pltpu

EMB = 64
HEADS = 4
HEAD_DIM = EMB // HEADS
MLP_DIM = 256
LN_EPS = 1e-5
VEC_ROWS = 8          # packed small-vector input: 8 rows x MLP_DIM lanes


def _layernorm(x, gamma, beta):
    mean = jnp.mean(x, axis=-1, keepdims=True)
    var = jnp.mean(jnp.square(x - mean), axis=-1, keepdims=True)
    return (x - mean) * jax.lax.rsqrt(var + LN_EPS) * gamma + beta


def _gelu_tanh(x):
    # tanh-approximate GELU: tanh runs on the EUP slot, erf burns VALU slots.
    # Deviation from exact erf GELU is ~1e-3 worst case -- inside the test tolerance.
    c = math.sqrt(2.0 / math.pi)
    return 0.5 * x * (1.0 + jnp.tanh(c * (x + 0.044715 * x * x * x)))


def encoder_layer_kernel(x_ref, win_ref, wo_ref, w1_ref, w2_ref, vec_ref, o_ref):
    Bt, S, E = x_ref.shape
    M = Bt * S

    # Packed bias / LayerNorm vectors (f32), one parameter per row.
    vecs = vec_ref[...]
    b_in = vecs[0:1, :3 * E]
    b_out = vecs[1:2, :E]
    g1, be1 = vecs[2:3, :E], vecs[3:4, :E]
    b1 = vecs[4:5, :MLP_DIM]
    b2 = vecs[5:6, :E]
    g2, be2 = vecs[6:7, :E], vecs[7:8, :E]

    # Fuse the batch block into the matmul M dimension.
    x = x_ref[...].reshape(M, E)                              # f32 residual stream
    x_bf = x.astype(jnp.bfloat16)

    # ---- QKV projection: one fused (M, E) x (E, 3E) MXU matmul -----------------
    qkv = jnp.dot(x_bf, win_ref[...],
                  preferred_element_type=jnp.float32) + b_in          # (M, 3E) f32
    qkv_bf = qkv.astype(jnp.bfloat16)                         # single bf16 cast

    # 1/sqrt(HEAD_DIM) = 0.25 is a power of two -> exact in bf16; fold it into q
    # once (hoisted out of the head loop).
    q = (qkv_bf[:, 0 * E:1 * E] * 0.25).reshape(Bt, S, E)
    k = qkv_bf[:, 1 * E:2 * E].reshape(Bt, S, E)
    v = qkv_bf[:, 2 * E:3 * E].reshape(Bt, S, E)

    # ---- Multi-head self-attention ---------------------------------------------
    heads = []
    for h in range(HEADS):
        lo = h * HEAD_DIM
        qh = q[:, :, lo:lo + HEAD_DIM]                        # (Bt, S, HD) bf16
        kh = k[:, :, lo:lo + HEAD_DIM]
        vh = v[:, :, lo:lo + HEAD_DIM]
        s = jnp.einsum('bqd,bkd->bqk', qh, kh,
                       preferred_element_type=jnp.float32)            # (Bt, S, S)
        s = s - jnp.max(s, axis=-1, keepdims=True)
        p = jnp.exp(s)
        p = p / jnp.sum(p, axis=-1, keepdims=True)            # exact divide (cheap)
        heads.append(jnp.einsum('bqk,bkd->bqd', p.astype(jnp.bfloat16), vh,
                                preferred_element_type=jnp.float32))  # (Bt, S, HD)

    # Lane-concat head outputs, then ONE (M, E) x (E, E) out-projection.
    attn = jnp.concatenate(heads, axis=-1).reshape(M, E)
    attn = jnp.dot(attn.astype(jnp.bfloat16), wo_ref[...],
                   preferred_element_type=jnp.float32) + b_out

    # ---- Residual + LayerNorm1 (f32) --------------------------------------------
    x1 = _layernorm(x + attn, g1, be1)

    # ---- MLP on the fused (M, *) slab --------------------------------------------
    h1 = jnp.dot(x1.astype(jnp.bfloat16), w1_ref[...],
                 preferred_element_type=jnp.float32) + b1
    h1 = _gelu_tanh(h1)
    h2 = jnp.dot(h1.astype(jnp.bfloat16), w2_ref[...],
                 preferred_element_type=jnp.float32) + b2

    # ---- Residual + LayerNorm2 (f32) --------------------------------------------
    out = _layernorm(x1 + h2, g2, be2)
    o_ref[...] = out.reshape(Bt, S, E).astype(o_ref.dtype)


def _pick_block_b(B, S, max_tokens=1024):
    """~1024 tokens per grid step (fills the MXU M dim, amortizes ~0.35us/step).
    If a single step would hold everything but both halves still give >=256 rows,
    split in two so v7x's second TensorCore gets work via "parallel" semantics."""
    bb = max(1, min(B, max(1, max_tokens // S)))
    if bb >= B and B * S >= 512:
        bb = -(-B // 2)
    return bb


def _pack_vectors(b_in, b_out, g1, be1, b1, b2, g2, be2):
    width = MLP_DIM

    def row(v):
        v = jnp.asarray(v, jnp.float32).reshape(-1)
        return jnp.pad(v, (0, width - v.shape[0]))

    return jnp.stack([row(b_in), row(b_out), row(g1), row(be1),
                      row(b1), row(b2), row(g2), row(be2)], axis=0)   # (8, 256) f32


def transformer_encoder_layer(x, params, block_b=None):
    B, S, E = x.shape
    assert E == EMB
    (w_in, b_in, w_out, b_out, g1, be1, w1, b1, w2, b2, g2, be2) = params

    # bf16 weights at the call boundary: MXU-native, half the weight DMA bytes.
    # Biases / LN params stay f32 (applied in f32 inside the kernel).
    w_in_bf = w_in.astype(jnp.bfloat16)
    w_out_bf = w_out.astype(jnp.bfloat16)
    w1_bf = w1.astype(jnp.bfloat16)
    w2_bf = w2.astype(jnp.bfloat16)
    vecs = _pack_vectors(b_in, b_out, g1, be1, b1, b2, g2, be2)

    Bt = _pick_block_b(B, S) if block_b is None else block_b
    Bp = ((B + Bt - 1) // Bt) * Bt                 # pad batch: no divisor cliff
    xp = jnp.pad(x, ((0, Bp - B), (0, 0), (0, 0))) if Bp != B else x

    full = lambda shape: pl.BlockSpec(shape, lambda b: tuple(0 for _ in shape))

    out = pl.pallas_call(
        encoder_layer_kernel,
        out_shape=jax.ShapeDtypeStruct((Bp, S, E), jnp.float32),
        grid_spec=pltpu.PrefetchScalarGridSpec(
            num_scalar_prefetch=0,
            grid=(Bp // Bt,),
            in_specs=[
                pl.BlockSpec((Bt, S, E), lambda b: (b, 0, 0)),   # x
                full((EMB, 3 * EMB)),                            # in_proj W (bf16)
                full((EMB, EMB)),                                # out_proj W (bf16)
                full((EMB, MLP_DIM)),                            # mlp W1 (bf16)
                full((MLP_DIM, EMB)),                            # mlp W2 (bf16)
                full((VEC_ROWS, MLP_DIM)),                       # packed biases/LN (f32)
            ],
            out_specs=pl.BlockSpec((Bt, S, E), lambda b: (b, 0, 0)),
        ),
        compiler_params=pltpu.CompilerParams(
            dimension_semantics=("parallel",),
            vmem_limit_bytes=32 * 1024 * 1024),
    )(xp, w_in_bf, w_out_bf, w1_bf, w2_bf, vecs)
    return out[:B] if Bp != B else out


def make_params(key):
    ks = jax.random.split(key, 6)
    scale = 0.05
    w_in = scale * jax.random.normal(ks[0], (EMB, 3 * EMB), jnp.float32)
    b_in = scale * jax.random.normal(ks[1], (1, 3 * EMB), jnp.float32)
    w_out = scale * jax.random.normal(ks[2], (EMB, EMB), jnp.float32)
    b_out = scale * jax.random.normal(ks[3], (1, EMB), jnp.float32)
    g1 = jnp.ones((1, EMB), jnp.float32)
    be1 = jnp.zeros((1, EMB), jnp.float32)
    w1 = scale * jax.random.normal(ks[4], (EMB, MLP_DIM), jnp.float32)
    b1 = jnp.zeros((1, MLP_DIM), jnp.float32)
    w2 = scale * jax.random.normal(ks[5], (MLP_DIM, EMB), jnp.float32)
    b2 = jnp.zeros((1, EMB), jnp.float32)
    g2 = jnp.ones((1, EMB), jnp.float32)
    be2 = jnp.zeros((1, EMB), jnp.float32)
    return (w_in, b_in, w_out, b_out, g1, be1, w1, b1, w2, b2, g2, be2)


def reference(x, params):
    (w_in, b_in, w_out, b_out, g1, be1, w1, b1, w2, b2, g2, be2) = params
    B, S, E = x.shape
    qkv = x @ w_in + b_in
    q, k, v = qkv[..., :EMB], qkv[..., EMB:2 * EMB], qkv[..., 2 * EMB:]
    qh = q.reshape(B, S, HEADS, HEAD_DIM).transpose(0, 2, 1, 3)
    kh = k.reshape(B, S, HEADS, HEAD_DIM).transpose(0, 2, 1, 3)
    vh = v.reshape(B, S, HEADS, HEAD_DIM).transpose(0, 2, 1, 3)
    s = jnp.einsum("bhqd,bhkd->bhqk", qh, kh) / math.sqrt(HEAD_DIM)
    p = jax.nn.softmax(s, axis=-1)
    a = jnp.einsum("bhqk,bhkd->bhqd", p, vh).transpose(0, 2, 1, 3).reshape(B, S, E)
    a = a @ w_out + b_out

    def ln(y, g, b):
        m = jnp.mean(y, -1, keepdims=True)
        vv = jnp.mean(jnp.square(y - m), -1, keepdims=True)
        return (y - m) / jnp.sqrt(vv + LN_EPS) * g + b

    x1 = ln(x + a, g1, be1)
    h = jax.nn.gelu(x1 @ w1 + b1, approximate=False)
    h = h @ w2 + b2
    return ln(x1 + h, g2, be2)


if __name__ == "__main__":
    key = jax.random.PRNGKey(0)
    kx, kp = jax.random.split(key)
    B, S = 2, 8
    x = jax.random.normal(kx, (B, S, EMB), jnp.float32)
    params = make_params(kp)

    out = transformer_encoder_layer(x, params)
    out = jax.block_until_ready(out)

    ref = reference(x, params)
    assert out.shape == (B, S, EMB)
    # bf16 matmul inputs + tanh-approx GELU give ~1e-3..1e-2-level differences vs
    # the pure-f32 / erf reference; tolerance stays at 2e-2.
    err = float(jnp.max(jnp.abs(out - ref)))
    assert jnp.allclose(out, ref, atol=2e-2, rtol=2e-2), err
    print("KERNEL_OK")
</pallas_src>

<mosaic_0001>
module attributes {stable_mosaic.version = 11 : i64} {
  func.func @encoder_layer_kernel(%arg0: i32, %arg1: memref<2x8x64xf32, #tpu.memory_space<vmem>>, %arg2: memref<64x192xbf16, #tpu.memory_space<vmem>>, %arg3: memref<64x64xbf16, #tpu.memory_space<vmem>>, %arg4: memref<64x256xbf16, #tpu.memory_space<vmem>>, %arg5: memref<256x64xbf16, #tpu.memory_space<vmem>>, %arg6: memref<8x256xf32, #tpu.memory_space<vmem>>, %arg7: memref<2x8x64xf32, #tpu.memory_space<vmem>>) attributes {dimension_semantics = [#tpu.dimension_semantics<parallel>], iteration_bounds = array<i64: 1>, scalar_prefetch = 0 : i64, scratch_operands = 0 : i64, tpu.core_type = #tpu.core_type<tc>, window_params = [{transform_indices = @transform_0, window_bounds = array<i64: 2, 8, 64>}, {pipeline_mode = #tpu.pipeline_mode<synchronous>, transform_indices = @transform_1, window_bounds = array<i64: 64, 192>}, {pipeline_mode = #tpu.pipeline_mode<synchronous>, transform_indices = @transform_2, window_bounds = array<i64: 64, 64>}, {pipeline_mode = #tpu.pipeline_mode<synchronous>, transform_indices = @transform_3, window_bounds = array<i64: 64, 256>}, {pipeline_mode = #tpu.pipeline_mode<synchronous>, transform_indices = @transform_4, window_bounds = array<i64: 256, 64>}, {pipeline_mode = #tpu.pipeline_mode<synchronous>, transform_indices = @transform_5, window_bounds = array<i64: 8, 256>}, {transform_indices = @transform_6, window_bounds = array<i64: 2, 8, 64>}]} {
    %c0 = arith.constant 0 : index
    %c0_0 = arith.constant 0 : index
    %0 = vector.load %arg6[%c0, %c0_0] : memref<8x256xf32, #tpu.memory_space<vmem>>, vector<8x256xf32>
    %1 = vector.extract_strided_slice %0 {offsets = [0, 0], sizes = [1, 192], strides = [1, 1]} : vector<8x256xf32> to vector<1x192xf32>
    %2 = vector.extract_strided_slice %0 {offsets = [1, 0], sizes = [1, 64], strides = [1, 1]} : vector<8x256xf32> to vector<1x64xf32>
    %3 = vector.extract_strided_slice %0 {offsets = [2, 0], sizes = [1, 64], strides = [1, 1]} : vector<8x256xf32> to vector<1x64xf32>
    %4 = vector.extract_strided_slice %0 {offsets = [3, 0], sizes = [1, 64], strides = [1, 1]} : vector<8x256xf32> to vector<1x64xf32>
    %5 = vector.extract_strided_slice %0 {offsets = [4, 0], sizes = [1, 256], strides = [1, 1]} : vector<8x256xf32> to vector<1x256xf32>
    %6 = vector.extract_strided_slice %0 {offsets = [5, 0], sizes = [1, 64], strides = [1, 1]} : vector<8x256xf32> to vector<1x64xf32>
    %7 = vector.extract_strided_slice %0 {offsets = [6, 0], sizes = [1, 64], strides = [1, 1]} : vector<8x256xf32> to vector<1x64xf32>
    %8 = vector.extract_strided_slice %0 {offsets = [7, 0], sizes = [1, 64], strides = [1, 1]} : vector<8x256xf32> to vector<1x64xf32>
    %c0_1 = arith.constant 0 : index
    %c0_2 = arith.constant 0 : index
    %c0_3 = arith.constant 0 : index
    %9 = vector.load %arg1[%c0_1, %c0_2, %c0_3] : memref<2x8x64xf32, #tpu.memory_space<vmem>>, vector<2x8x64xf32>
    %10 = vector.shape_cast %9 : vector<2x8x64xf32> to vector<16x64xf32>
    %11 = arith.truncf %10 : vector<16x64xf32> to vector<16x64xbf16>
    %c0_4 = arith.constant 0 : index
    %c0_5 = arith.constant 0 : index
    %12 = vector.load %arg2[%c0_4, %c0_5] : memref<64x192xbf16, #tpu.memory_space<vmem>>, vector<64x192xbf16>
    %cst = arith.constant dense<0.000000e+00> : vector<16x192xf32>
    %13 = tpu.matmul %11, %12, %cst {dimension_numbers = #tpu.dot_dimension_numbers<[1], [0], [0], [1], [0, 0, 1, 1], [], []>} : vector<16x64xbf16>, vector<64x192xbf16>, vector<16x192xf32> -> vector<16x192xf32>
    %14 = vector.broadcast %1 : vector<1x192xf32> to vector<16x192xf32>
    %15 = arith.addf %13, %14 : vector<16x192xf32>
    %16 = arith.truncf %15 : vector<16x192xf32> to vector<16x192xbf16>
    %17 = vector.extract_strided_slice %16 {offsets = [0, 0], sizes = [16, 64], strides = [1, 1]} : vector<16x192xbf16> to vector<16x64xbf16>
    %cst_6 = arith.constant 2.500000e-01 : bf16
    %18 = vector.broadcast %cst_6 : bf16 to vector<16x64xbf16>
    %19 = arith.mulf %17, %18 : vector<16x64xbf16>
    %20 = vector.shape_cast %19 : vector<16x64xbf16> to vector<2x8x64xbf16>
    %21 = vector.extract_strided_slice %16 {offsets = [0, 64], sizes = [16, 64], strides = [1, 1]} : vector<16x192xbf16> to vector<16x64xbf16>
    %22 = vector.shape_cast %21 : vector<16x64xbf16> to vector<2x8x64xbf16>
    %23 = vector.extract_strided_slice %16 {offsets = [0, 128], sizes = [16, 64], strides = [1, 1]} : vector<16x192xbf16> to vector<16x64xbf16>
    %24 = vector.shape_cast %23 : vector<16x64xbf16> to vector<2x8x64xbf16>
    %25 = vector.extract_strided_slice %20 {offsets = [0, 0, 0], sizes = [2, 8, 16], strides = [1, 1, 1]} : vector<2x8x64xbf16> to vector<2x8x16xbf16>
    %26 = vector.extract_strided_slice %22 {offsets = [0, 0, 0], sizes = [2, 8, 16], strides = [1, 1, 1]} : vector<2x8x64xbf16> to vector<2x8x16xbf16>
    %27 = vector.extract_strided_slice %24 {offsets = [0, 0, 0], sizes = [2, 8, 16], strides = [1, 1, 1]} : vector<2x8x64xbf16> to vector<2x8x16xbf16>
    "tpu.trace_start"() <{level = 10 : i32, message = "bqd,bkd->bqk"}> : () -> ()
    %cst_7 = arith.constant dense<0.000000e+00> : vector<2x8x8xf32>
    %28 = tpu.matmul %25, %26, %cst_7 {dimension_numbers = #tpu.dot_dimension_numbers<[2], [2], [1], [1], [0, 0, 0, 1, 1, 1], [0], [0]>} : vector<2x8x16xbf16>, vector<2x8x16xbf16>, vector<2x8x8xf32> -> vector<2x8x8xf32>
    "tpu.trace_stop"() : () -> ()
    %cst_8 = arith.constant dense<0xFF800000> : vector<2x8xf32>
    %29 = vector.multi_reduction <maximumf>, %28, %cst_8 [2] : vector<2x8x8xf32> to vector<2x8xf32>
    %30 = vector.shape_cast %29 : vector<2x8xf32> to vector<2x8x1xf32>
    %31 = vector.broadcast %30 : vector<2x8x1xf32> to vector<2x8x8xf32>
    %32 = arith.subf %28, %31 : vector<2x8x8xf32>
    %33 = math.exp %32 : vector<2x8x8xf32>
    %cst_9 = arith.constant dense<0.000000e+00> : vector<2x8xf32>
    %34 = vector.multi_reduction <add>, %33, %cst_9 [2] : vector<2x8x8xf32> to vector<2x8xf32>
    %35 = vector.shape_cast %34 : vector<2x8xf32> to vector<2x8x1xf32>
    %36 = vector.broadcast %35 : vector<2x8x1xf32> to vector<2x8x8xf32>
    %37 = arith.divf %33, %36 : vector<2x8x8xf32>
    %38 = arith.truncf %37 : vector<2x8x8xf32> to vector<2x8x8xbf16>
    "tpu.trace_start"() <{level = 10 : i32, message = "bqk,bkd->bqd"}> : () -> ()
    %cst_10 = arith.constant dense<0.000000e+00> : vector<2x8x16xf32>
    %39 = tpu.matmul %38, %27, %cst_10 {dimension_numbers = #tpu.dot_dimension_numbers<[2], [1], [1], [2], [0, 0, 0, 1, 1, 2], [0], [0]>} : vector<2x8x8xbf16>, vector<2x8x16xbf16>, vector<2x8x16xf32> -> vector<2x8x16xf32>
    "tpu.trace_stop"() : () -> ()
    %40 = vector.extract_strided_slice %20 {offsets = [0, 0, 16], sizes = [2, 8, 16], strides = [1, 1, 1]} : vector<2x8x64xbf16> to vector<2x8x16xbf16>
    %41 = vector.extract_strided_slice %22 {offsets = [0, 0, 16], sizes = [2, 8, 16], strides = [1, 1, 1]} : vector<2x8x64xbf16> to vector<2x8x16xbf16>
    %42 = vector.extract_strided_slice %24 {offsets = [0, 0, 16], sizes = [2, 8, 16], strides = [1, 1, 1]} : vector<2x8x64xbf16> to vector<2x8x16xbf16>
    "tpu.trace_start"() <{level = 10 : i32, message = "bqd,bkd->bqk"}> : () -> ()
    %cst_11 = arith.constant dense<0.000000e+00> : vector<2x8x8xf32>
    %43 = tpu.matmul %40, %41, %cst_11 {dimension_numbers = #tpu.dot_dimension_numbers<[2], [2], [1], [1], [0, 0, 0, 1, 1, 1], [0], [0]>} : vector<2x8x16xbf16>, vector<2x8x16xbf16>, vector<2x8x8xf32> -> vector<2x8x8xf32>
    "tpu.trace_stop"() : () -> ()
    %cst_12 = arith.constant dense<0xFF800000> : vector<2x8xf32>
    %44 = vector.multi_reduction <maximumf>, %43, %cst_12 [2] : vector<2x8x8xf32> to vector<2x8xf32>
    %45 = vector.shape_cast %44 : vector<2x8xf32> to vector<2x8x1xf32>
    %46 = vector.broadcast %45 : vector<2x8x1xf32> to vector<2x8x8xf32>
    %47 = arith.subf %43, %46 : vector<2x8x8xf32>
    %48 = math.exp %47 : vector<2x8x8xf32>
    %cst_13 = arith.constant dense<0.000000e+00> : vector<2x8xf32>
    %49 = vector.multi_reduction <add>, %48, %cst_13 [2] : vector<2x8x8xf32> to vector<2x8xf32>
    %50 = vector.shape_cast %49 : vector<2x8xf32> to vector<2x8x1xf32>
    %51 = vector.broadcast %50 : vector<2x8x1xf32> to vector<2x8x8xf32>
    %52 = arith.divf %48, %51 : vector<2x8x8xf32>
    %53 = arith.truncf %52 : vector<2x8x8xf32> to vector<2x8x8xbf16>
    "tpu.trace_start"() <{level = 10 : i32, message = "bqk,bkd->bqd"}> : () -> ()
    %cst_14 = arith.constant dense<0.000000e+00> : vector<2x8x16xf32>
    %54 = tpu.matmul %53, %42, %cst_14 {dimension_numbers = #tpu.dot_dimension_numbers<[2], [1], [1], [2], [0, 0, 0, 1, 1, 2], [0], [0]>} : vector<2x8x8xbf16>, vector<2x8x16xbf16>, vector<2x8x16xf32> -> vector<2x8x16xf32>
    "tpu.trace_stop"() : () -> ()
    %55 = vector.extract_strided_slice %20 {offsets = [0, 0, 32], sizes = [2, 8, 16], strides = [1, 1, 1]} : vector<2x8x64xbf16> to vector<2x8x16xbf16>
    %56 = vector.extract_strided_slice %22 {offsets = [0, 0, 32], sizes = [2, 8, 16], strides = [1, 1, 1]} : vector<2x8x64xbf16> to vector<2x8x16xbf16>
    %57 = vector.extract_strided_slice %24 {offsets = [0, 0, 32], sizes = [2, 8, 16], strides = [1, 1, 1]} : vector<2x8x64xbf16> to vector<2x8x16xbf16>
    "tpu.trace_start"() <{level = 10 : i32, message = "bqd,bkd->bqk"}> : () -> ()
    %cst_15 = arith.constant dense<0.000000e+00> : vector<2x8x8xf32>
    %58 = tpu.matmul %55, %56, %cst_15 {dimension_numbers = #tpu.dot_dimension_numbers<[2], [2], [1], [1], [0, 0, 0, 1, 1, 1], [0], [0]>} : vector<2x8x16xbf16>, vector<2x8x16xbf16>, vector<2x8x8xf32> -> vector<2x8x8xf32>
    "tpu.trace_stop"() : () -> ()
    %cst_16 = arith.constant dense<0xFF800000> : vector<2x8xf32>
    %59 = vector.multi_reduction <maximumf>, %58, %cst_16 [2] : vector<2x8x8xf32> to vector<2x8xf32>
    %60 = vector.shape_cast %59 : vector<2x8xf32> to vector<2x8x1xf32>
    %61 = vector.broadcast %60 : vector<2x8x1xf32> to vector<2x8x8xf32>
    %62 = arith.subf %58, %61 : vector<2x8x8xf32>
    %63 = math.exp %62 : vector<2x8x8xf32>
    %cst_17 = arith.constant dense<0.000000e+00> : vector<2x8xf32>
    %64 = vector.multi_reduction <add>, %63, %cst_17 [2] : vector<2x8x8xf32> to vector<2x8xf32>
    %65 = vector.shape_cast %64 : vector<2x8xf32> to vector<2x8x1xf32>
    %66 = vector.broadcast %65 : vector<2x8x1xf32> to vector<2x8x8xf32>
    %67 = arith.divf %63, %66 : vector<2x8x8xf32>
    %68 = arith.truncf %67 : vector<2x8x8xf32> to vector<2x8x8xbf16>
    "tpu.trace_start"() <{level = 10 : i32, message = "bqk,bkd->bqd"}> : () -> ()
    %cst_18 = arith.constant dense<0.000000e+00> : vector<2x8x16xf32>
    %69 = tpu.matmul %68, %57, %cst_18 {dimension_numbers = #tpu.dot_dimension_numbers<[2], [1], [1], [2], [0, 0, 0, 1, 1, 2], [0], [0]>} : vector<2x8x8xbf16>, vector<2x8x16xbf16>, vector<2x8x16xf32> -> vector<2x8x16xf32>
    "tpu.trace_stop"() : () -> ()
    %70 = vector.extract_strided_slice %20 {offsets = [0, 0, 48], sizes = [2, 8, 16], strides = [1, 1, 1]} : vector<2x8x64xbf16> to vector<2x8x16xbf16>
    %71 = vector.extract_strided_slice %22 {offsets = [0, 0, 48], sizes = [2, 8, 16], strides = [1, 1, 1]} : vector<2x8x64xbf16> to vector<2x8x16xbf16>
    %72 = vector.extract_strided_slice %24 {offsets = [0, 0, 48], sizes = [2, 8, 16], strides = [1, 1, 1]} : vector<2x8x64xbf16> to vector<2x8x16xbf16>
    "tpu.trace_start"() <{level = 10 : i32, message = "bqd,bkd->bqk"}> : () -> ()
    %cst_19 = arith.constant dense<0.000000e+00> : vector<2x8x8xf32>
    %73 = tpu.matmul %70, %71, %cst_19 {dimension_numbers = #tpu.dot_dimension_numbers<[2], [2], [1], [1], [0, 0, 0, 1, 1, 1], [0], [0]>} : vector<2x8x16xbf16>, vector<2x8x16xbf16>, vector<2x8x8xf32> -> vector<2x8x8xf32>
    "tpu.trace_stop"() : () -> ()
    %cst_20 = arith.constant dense<0xFF800000> : vector<2x8xf32>
    %74 = vector.multi_reduction <maximumf>, %73, %cst_20 [2] : vector<2x8x8xf32> to vector<2x8xf32>
    %75 = vector.shape_cast %74 : vector<2x8xf32> to vector<2x8x1xf32>
    %76 = vector.broadcast %75 : vector<2x8x1xf32> to vector<2x8x8xf32>
    %77 = arith.subf %73, %76 : vector<2x8x8xf32>
    %78 = math.exp %77 : vector<2x8x8xf32>
    %cst_21 = arith.constant dense<0.000000e+00> : vector<2x8xf32>
    %79 = vector.multi_reduction <add>, %78, %cst_21 [2] : vector<2x8x8xf32> to vector<2x8xf32>
    %80 = vector.shape_cast %79 : vector<2x8xf32> to vector<2x8x1xf32>
    %81 = vector.broadcast %80 : vector<2x8x1xf32> to vector<2x8x8xf32>
    %82 = arith.divf %78, %81 : vector<2x8x8xf32>
    %83 = arith.truncf %82 : vector<2x8x8xf32> to vector<2x8x8xbf16>
    "tpu.trace_start"() <{level = 10 : i32, message = "bqk,bkd->bqd"}> : () -> ()
    %cst_22 = arith.constant dense<0.000000e+00> : vector<2x8x16xf32>
    %84 = tpu.matmul %83, %72, %cst_22 {dimension_numbers = #tpu.dot_dimension_numbers<[2], [1], [1], [2], [0, 0, 0, 1, 1, 2], [0], [0]>} : vector<2x8x8xbf16>, vector<2x8x16xbf16>, vector<2x8x16xf32> -> vector<2x8x16xf32>
    "tpu.trace_stop"() : () -> ()
    %85 = tpu.concatenate %39, %54, %69, %84 in 2 : vector<2x8x16xf32>, vector<2x8x16xf32>, vector<2x8x16xf32>, vector<2x8x16xf32> -> vector<2x8x64xf32>
    %86 = vector.shape_cast %85 : vector<2x8x64xf32> to vector<16x64xf32>
    %87 = arith.truncf %86 : vector<16x64xf32> to vector<16x64xbf16>
    %c0_23 = arith.constant 0 : index
    %c0_24 = arith.constant 0 : index
    %88 = vector.load %arg3[%c0_23, %c0_24] : memref<64x64xbf16, #tpu.memory_space<vmem>>, vector<64x64xbf16>
    %cst_25 = arith.constant dense<0.000000e+00> : vector<16x64xf32>
    %89 = tpu.matmul %87, %88, %cst_25 {dimension_numbers = #tpu.dot_dimension_numbers<[1], [0], [0], [1], [0, 0, 1, 1], [], []>} : vector<16x64xbf16>, vector<64x64xbf16>, vector<16x64xf32> -> vector<16x64xf32>
    %90 = vector.broadcast %2 : vector<1x64xf32> to vector<16x64xf32>
    %91 = arith.addf %89, %90 : vector<16x64xf32>
    %92 = arith.addf %10, %91 : vector<16x64xf32>
    %cst_26 = arith.constant dense<0.000000e+00> : vector<16xf32>
    %93 = vector.multi_reduction <add>, %92, %cst_26 [1] : vector<16x64xf32> to vector<16xf32>
    %94 = vector.shape_cast %93 : vector<16xf32> to vector<16x1xf32>
    %cst_27 = arith.constant 6.400000e+01 : f32
    %95 = vector.broadcast %cst_27 : f32 to vector<16x1xf32>
    %96 = arith.divf %94, %95 : vector<16x1xf32>
    %97 = vector.broadcast %96 : vector<16x1xf32> to vector<16x64xf32>
    %98 = arith.subf %92, %97 : vector<16x64xf32>
    %99 = arith.mulf %98, %98 : vector<16x64xf32>
    %cst_28 = arith.constant dense<0.000000e+00> : vector<16xf32>
    %100 = vector.multi_reduction <add>, %99, %cst_28 [1] : vector<16x64xf32> to vector<16xf32>
    %101 = vector.shape_cast %100 : vector<16xf32> to vector<16x1xf32>
    %cst_29 = arith.constant 6.400000e+01 : f32
    %102 = vector.broadcast %cst_29 : f32 to vector<16x1xf32>
    %103 = arith.divf %101, %102 : vector<16x1xf32>
    %104 = vector.broadcast %96 : vector<16x1xf32> to vector<16x64xf32>
    %105 = arith.subf %92, %104 : vector<16x64xf32>
    %cst_30 = arith.constant 9.99999974E-6 : f32
    %106 = vector.broadcast %cst_30 : f32 to vector<16x1xf32>
    %107 = arith.addf %103, %106 : vector<16x1xf32>
    %108 = math.rsqrt %107 : vector<16x1xf32>
    %109 = vector.broadcast %108 : vector<16x1xf32> to vector<16x64xf32>
    %110 = arith.mulf %105, %109 : vector<16x64xf32>
    %111 = vector.broadcast %3 : vector<1x64xf32> to vector<16x64xf32>
    %112 = arith.mulf %110, %111 : vector<16x64xf32>
    %113 = vector.broadcast %4 : vector<1x64xf32> to vector<16x64xf32>
    %114 = arith.addf %112, %113 : vector<16x64xf32>
    %115 = arith.truncf %114 : vector<16x64xf32> to vector<16x64xbf16>
    %c0_31 = arith.constant 0 : index
    %c0_32 = arith.constant 0 : index
    %116 = vector.load %arg4[%c0_31, %c0_32] : memref<64x256xbf16, #tpu.memory_space<vmem>>, vector<64x256xbf16>
    %cst_33 = arith.constant dense<0.000000e+00> : vector<16x256xf32>
    %117 = tpu.matmul %115, %116, %cst_33 {dimension_numbers = #tpu.dot_dimension_numbers<[1], [0], [0], [1], [0, 0, 1, 1], [], []>} : vector<16x64xbf16>, vector<64x256xbf16>, vector<16x256xf32> -> vector<16x256xf32>
    %118 = vector.broadcast %5 : vector<1x256xf32> to vector<16x256xf32>
    %119 = arith.addf %117, %118 : vector<16x256xf32>
    %cst_34 = arith.constant 5.000000e-01 : f32
    %120 = vector.broadcast %cst_34 : f32 to vector<16x256xf32>
    %121 = arith.mulf %120, %119 : vector<16x256xf32>
    %cst_35 = arith.constant 4.471500e-02 : f32
    %122 = vector.broadcast %cst_35 : f32 to vector<16x256xf32>
    %123 = arith.mulf %122, %119 : vector<16x256xf32>
    %124 = arith.mulf %123, %119 : vector<16x256xf32>
    %125 = arith.mulf %124, %119 : vector<16x256xf32>
    %126 = arith.addf %119, %125 : vector<16x256xf32>
    %cst_36 = arith.constant 0.797884583 : f32
    %127 = vector.broadcast %cst_36 : f32 to vector<16x256xf32>
    %128 = arith.mulf %127, %126 : vector<16x256xf32>
    %129 = math.tanh %128 : vector<16x256xf32>
    %cst_37 = arith.constant 1.000000e+00 : f32
    %130 = vector.broadcast %cst_37 : f32 to vector<16x256xf32>
    %131 = arith.addf %130, %129 : vector<16x256xf32>
    %132 = arith.mulf %121, %131 : vector<16x256xf32>
    %133 = arith.truncf %132 : vector<16x256xf32> to vector<16x256xbf16>
    %c0_38 = arith.constant 0 : index
    %c0_39 = arith.constant 0 : index
    %134 = vector.load %arg5[%c0_38, %c0_39] : memref<256x64xbf16, #tpu.memory_space<vmem>>, vector<256x64xbf16>
    %cst_40 = arith.constant dense<0.000000e+00> : vector<16x64xf32>
    %135 = tpu.matmul %133, %134, %cst_40 {dimension_numbers = #tpu.dot_dimension_numbers<[1], [0], [0], [1], [0, 0, 1, 1], [], []>} : vector<16x256xbf16>, vector<256x64xbf16>, vector<16x64xf32> -> vector<16x64xf32>
    %136 = vector.broadcast %6 : vector<1x64xf32> to vector<16x64xf32>
    %137 = arith.addf %135, %136 : vector<16x64xf32>
    %138 = arith.addf %114, %137 : vector<16x64xf32>
    %cst_41 = arith.constant dense<0.000000e+00> : vector<16xf32>
    %139 = vector.multi_reduction <add>, %138, %cst_41 [1] : vector<16x64xf32> to vector<16xf32>
    %140 = vector.shape_cast %139 : vector<16xf32> to vector<16x1xf32>
    %cst_42 = arith.constant 6.400000e+01 : f32
    %141 = vector.broadcast %cst_42 : f32 to vector<16x1xf32>
    %142 = arith.divf %140, %141 : vector<16x1xf32>
    %143 = vector.broadcast %142 : vector<16x1xf32> to vector<16x64xf32>
    %144 = arith.subf %138, %143 : vector<16x64xf32>
    %145 = arith.mulf %144, %144 : vector<16x64xf32>
    %cst_43 = arith.constant dense<0.000000e+00> : vector<16xf32>
    %146 = vector.multi_reduction <add>, %145, %cst_43 [1] : vector<16x64xf32> to vector<16xf32>
    %147 = vector.shape_cast %146 : vector<16xf32> to vector<16x1xf32>
    %cst_44 = arith.constant 6.400000e+01 : f32
    %148 = vector.broadcast %cst_44 : f32 to vector<16x1xf32>
    %149 = arith.divf %147, %148 : vector<16x1xf32>
    %150 = vector.broadcast %142 : vector<16x1xf32> to vector<16x64xf32>
    %151 = arith.subf %138, %150 : vector<16x64xf32>
    %cst_45 = arith.constant 9.99999974E-6 : f32
    %152 = vector.broadcast %cst_45 : f32 to vector<16x1xf32>
    %153 = arith.addf %149, %152 : vector<16x1xf32>
    %154 = math.rsqrt %153 : vector<16x1xf32>
    %155 = vector.broadcast %154 : vector<16x1xf32> to vector<16x64xf32>
    %156 = arith.mulf %151, %155 : vector<16x64xf32>
    %157 = vector.broadcast %7 : vector<1x64xf32> to vector<16x64xf32>
    %158 = arith.mulf %156, %157 : vector<16x64xf32>
    %159 = vector.broadcast %8 : vector<1x64xf32> to vector<16x64xf32>
    %160 = arith.addf %158, %159 : vector<16x64xf32>
    %161 = vector.shape_cast %160 : vector<16x64xf32> to vector<2x8x64xf32>
    %c0_46 = arith.constant 0 : index
    %c0_47 = arith.constant 0 : index
    %c0_48 = arith.constant 0 : index
    %162 = vector.load %arg7[%c0_46, %c0_47, %c0_48] : memref<2x8x64xf32, #tpu.memory_space<vmem>>, vector<2x8x64xf32>
    tpu.vector_store %arg7[%c0_46, %c0_47, %c0_48], %161 {strides = array<i32>} : memref<2x8x64xf32, #tpu.memory_space<vmem>>, vector<2x8x64xf32>,
    return
  }
  func.func @transform_0(%arg0: i32) -> (i32, i32, i32) {
    %c0_i32 = arith.constant 0 : i32
    %c0_i32_0 = arith.constant 0 : i32
    %c0_i32_1 = arith.constant 0 : i32
    return %arg0, %c0_i32, %c0_i32_0 : i32, i32, i32
  }
  func.func @transform_1(%arg0: i32) -> (i32, i32) {
    %c0_i32 = arith.constant 0 : i32
    %c0_i32_0 = arith.constant 0 : i32
    %c0_i32_1 = arith.constant 0 : i32
    return %c0_i32, %c0_i32_0 : i32, i32
  }
  func.func @transform_2(%arg0: i32) -> (i32, i32) {
    %c0_i32 = arith.constant 0 : i32
    %c0_i32_0 = arith.constant 0 : i32
    %c0_i32_1 = arith.constant 0 : i32
    return %c0_i32, %c0_i32_0 : i32, i32
  }
  func.func @transform_3(%arg0: i32) -> (i32, i32) {
    %c0_i32 = arith.constant 0 : i32
    %c0_i32_0 = arith.constant 0 : i32
    %c0_i32_1 = arith.constant 0 : i32
    return %c0_i32, %c0_i32_0 : i32, i32
  }
  func.func @transform_4(%arg0: i32) -> (i32, i32) {
    %c0_i32 = arith.constant 0 : i32
    %c0_i32_0 = arith.constant 0 : i32
    %c0_i32_1 = arith.constant 0 : i32
    return %c0_i32, %c0_i32_0 : i32, i32
  }
  func.func @transform_5(%arg0: i32) -> (i32, i32) {
    %c0_i32 = arith.constant 0 : i32
    %c0_i32_0 = arith.constant 0 : i32
    %c0_i32_1 = arith.constant 0 : i32
    return %c0_i32, %c0_i32_0 : i32, i32
  }
  func.func @transform_6(%arg0: i32) -> (i32, i32, i32) {
    %c0_i32 = arith.constant 0 : i32
    %c0_i32_0 = arith.constant 0 : i32
    %c0_i32_1 = arith.constant 0 : i32
    return %arg0, %c0_i32, %c0_i32_0 : i32, i32, i32
  }
}

</mosaic_0001>

<bundles_post_ra>
// kernel: tpu_custom_call.1
= control target key start
LH: loop header
LB: loop body
LE: loop exit
PB: predicated region body
PF: predicated region fallthrough
CT: control target
= control target key end

     0   :  { %v1928_v2 = vmov 0   ;;  %vm87_vm0 = vcmask 523264   ;;  %s2330_s0 = inlined_call_operand.vmem [shape: f32[2,8,64], index: 0, kind: input, shape index: {}]   ;;  %s2331_s1 = inlined_call_operand.vmem [shape: bf16[64,192], index: 1, kind: input, shape index: {}]   ;;  %s2332_s2 = inlined_call_operand.vmem [shape: bf16[64,64], index: 2, kind: input, shape index: {}]   ;;  %s2333_s3 = inlined_call_operand.vmem [shape: bf16[64,256], index: 3, kind: input, shape index: {}]   ;;  %s2334_s4 = inlined_call_operand.vmem [shape: bf16[256,64], index: 4, kind: input, shape index: {}]   ;;  %s2335_s5 = inlined_call_operand.vmem [shape: f32[8,256], index: 5, kind: input, shape index: {}]   ;;  %s2336_s6 = inlined_call_operand.hbm [shape: f32[2,8,64], index: 6, kind: output, shape index: {}]  }
   0x1   :  { %v1813_v0 = vld [vmem:[%s2331_s1 + $0x34] ss:$8 sps:$4 sm:$0xff]   ;;  %v1815_v1 = vld [vmem:[%s2331_s1 + $0x30] ss:$8 sps:$4 sm:$0xff]   ;;  %123 = vmatprep.mubr.bf16.mxu1 %v1928_v2  ;;  %v1816_v3 = vld [vmem:[%s2331_s1 + $0x24] ss:$8 sps:$4 sm:$0xff]  }
   0x2   :  { %99 = vmatprep.subr.bf16.mxu1 %v1813_v0  ;;  %v1818_v4 = vld [vmem:[%s2331_s1 + $0x20] ss:$8 sps:$4 sm:$0xff]   ;;  %v1819_v5 = vld [vmem:[%s2331_s1 + $0x14] ss:$8 sps:$4 sm:$0xff]   ;;  %v1821_v6 = vld [vmem:[%s2331_s1 + $0x10] ss:$8 sps:$4 sm:$0xff]  }
   0x3   :  { %100 = vmatpush1.bf16.msra.mxu1 %v1815_v1  ;;  %v1822_v7 = vld [vmem:[%s2331_s1 + $0x4] ss:$8 sps:$4 sm:$0xff]   ;;  %v1824_v8 = vld [vmem:[%s2331_s1] ss:$8 sps:$4 sm:$0xff]  }
   0x4   :  { %101 = vmatprep.subr.bf16.mxu1 %v1816_v3  ;;  %v2004_v9 = vld [vmem:[%s2330_s0] sm:$0xff]  ;;  %v2009_v10 = vld [vmem:[%s2330_s0 + $0x8] sm:$0xff] }
   0x5   :  { %v30_v11 = vpack.c.bf16 %v2009_v10, %v2004_v9 }
   0x7   :  { %102 = vmatpush1.bf16.msra.mxu1 %v1818_v4 }
   0x8   :  { %103 = vmatprep.subr.bf16.mxu1 %v1819_v5 }
   0xb   :  { %104 = vmatpush1.bf16.msra.mxu1 %v1821_v6 }
   0xc   :  { %105 = vmatprep.subr.bf16.mxu1 %v1822_v7 }
   0xf   :  { %106 = vmatpush1.bf16.msra.mxu1 %v1824_v8 }
  0x12   :  { %1561 = vmatmul.mubr.msk.bf16.vlgmr.msra.gmra.mxu1 %vm87_vm0, %v30_v11 }
  0x13   :  { %11 = vsyncpa [#allocation3], 0  ;;  %v1929_v12 = vmov 0.0   ;;  %v39_v13 = vlaneseq  ;;  %v2022_v16 = vld [vmem:[%s2335_s5] sm:$0xff]  ;;  %v2027_v17 = vld [vmem:[%s2335_s5 + $0x8] sm:$0xff]  ;;  %vm1930_vm1 = vmmov 0  }
  0x14   :  { %1689 = vmatprep.subr.bf16.mxu0 %v1929_v12  ;;  %1677 = vmatprep.subr.bf16.mxu1 %v1929_v12  ;;  %vm277_vm2 = vcmask 1043456   ;;  %s1931_s19 = smov 64   ;;  %vm153_vm3 = vcmask 130048   ;;  %vm249_vm4 = vcmask 64512   ;;  %s1932_s20 = smov 48   ;;  %vm1053_vm5 = vcmask 261120  }
  0x15   :  { %v2016_v14 = vshrl.u32 %v39_v13, 7  ;;  %1679 = vmatprep.mubr.msk.bf16.mxu1 %vm1930_vm1, %v1929_v12  ;;  %1691 = vmatprep.mubr.msk.bf16.mxu0 %vm1930_vm1, %v1929_v12  ;;  %s1933_s21 = smov 112   ;;  %s1934_s22 = smov 32   ;;  %vm1056_vm6 = vcmask 392192  }
  0x16   :  { %s1935_s23 = smov 96   ;;  %s1936_s24 = smov 16  }
  0x17   :  { %v41_v15 = vsub.s32 0, %v2016_v14  ;;  %s1937_s25 = smov 80  }
  0x19   :  { %v42_v18 = vrot.slane %v2022_v16, %v41_v15  ;;  %v46_v19 = vrot.slane %v2027_v17, %v41_v15 }
  0xd2   :  { %v125_v20 = vpop.f32.mrf.mxu1 }
  0xd3   :  { %v126_v21 = vadd.f32 %v125_v20, %v42_v18 }
  0xd4   :  { %v127_v22 = vpop.f32.mrf.mxu1 }
  0xd5   :  { %v2035_v23 = vpack.c.bf16 %v126_v21, %v126_v21  ;;  %v128_v24 = vadd.f32 %v127_v22, %v46_v19 }
  0xd6   :  { %v129_v25 = vpop.f32.mrf.mxu1 }
  0xd7   :  { %v2037_v26 = vpack.c.bf16 %v128_v24, %v128_v24  ;;  %v130_v27 = vadd.f32 %v129_v25, %v42_v18  ;;  %151 = vrot.lane.b32.xlu0 %v2035_v23, %s1931_s19 }
  0xd8   :  { %v131_v34 = vpop.f32.mrf.mxu1 }
  0xd9   :  { %v134_v28 = vpack.c.bf16 %v130_v27, %v126_v21  ;;  %v2040_v29 = vpack.c.bf16 %v130_v27, %v130_v27  ;;  %v279_v30 = vsel %vm277_vm2, %v2037_v26, 0  ;;  %v132_v37 = vadd.f32 %v131_v34, %v46_v19 }
  0xda   :  { %1690 = vmatpush3.bf16.msra.mxu0 %v279_v30 }
  0xdb   :  { %201 = vrot.lane.b32.xlu0 %v2040_v29, %s1931_s19  ;;  %1701 = vmatprep.subr.bf16.mxu0 %v1929_v12  ;;  %v136_v33 = vmul.bf16 1048592000, %v134_v28  ;;  %v2056_v39 = vpack.c.bf16 %v132_v37, %v132_v37 }
  0xdd   :  { %v2048_v36 = vcombine.low %v136_v33, %v136_v33  ;;  %v2058_v40 = vcombine.high %v136_v33, %v136_v33  ;;  %v325_v41 = vsel %vm277_vm2, %v2056_v39, 0 }
 0x149   :  { %v152_v31 = vpop.permute.xlu0 %151 }
 0x14a   :  { %v158_v32 = vsel %vm153_vm3, %v152_v31, 0 }
 0x14b   :  { %1678 = vmatpush3.bf16.xpose.msra.mxu1 %v158_v32 }
 0x14c   :  { %1683 = vmatprep.subr.bf16.mxu1 %v1929_v12 }
 0x14d   :  { %v202_v35 = vpop.permute.xlu0 %201 }
 0x14e   :  { %v207_v38 = vsel %vm153_vm3, %v202_v35, 0 }
 0x152   :  { %1680 = vmatmul.mubr.msk.bf16.vlgmr.msra.gmra.mxu1 %vm153_vm3, %v2048_v36 }
 0x153   :  { %1684 = vmatpush3.bf16.xpose.msra.mxu1 %v207_v38  ;;  %1685 = vmatprep.mubr.msk.bf16.mxu1 %vm1930_vm1, %v1929_v12 }
 0x154   :  { %1695 = vmatprep.subr.bf16.mxu1 %v1929_v12 }
 0x15a   :  { %1686 = vmatmul.mubr.msk.bf16.vlgmr.msra.gmra.mxu1 %vm153_vm3, %v2058_v40 }
 0x15b   :  { %1696 = vmatpush3.bf16.msra.mxu1 %v325_v41  ;;  %1697 = vmatprep.mubr.msk.bf16.mxu1 %vm1930_vm1, %v1929_v12 }
 0x15c   :  { %1707 = vmatprep.subr.bf16.mxu1 %v1929_v12 }
 0x212   :  { %v194_v42 = vpop.f32.mrf.mxu1 }
 0x213   :  { %v250_v43 = vsel %vm249_vm4, %v194_v42, -inf }
 0x214   :  { %251 = vmax.xlane.f32.xlu1 %v250_v43  ;;  %v1681_v44 = vpop.f32.mrf.mxu1 }
 0x216   :  { %v197_v45 = vpop.f32.mrf.mxu1 }
 0x218   :  { %v1682_v46 = vpop.f32.mrf.mxu1 }
 0x21a   :  { %v243_v47 = vpop.f32.mrf.mxu1 }
 0x21b   :  { %v253_v48 = vsel %vm249_vm4, %v243_v47, -inf }
 0x21c   :  { %254 = vmax.xlane.f32.xlu1 %v253_v48  ;;  %v1687_v49 = vpop.f32.mrf.mxu1 }
 0x21e   :  { %v246_v50 = vpop.f32.mrf.mxu1 }
 0x220   :  { %v1688_v51 = vpop.f32.mrf.mxu1 }
 0x22d   :  { %369 = vrot.lane.b32.xlu1 %v2035_v23, %s1932_s20 }
 0x231   :  { %419 = vrot.lane.b32.xlu1 %v2040_v29, %s1932_s20 }
 0x29d   :  { %v252_v52 = vpop.xlane.xlu1 %251 }
 0x29e   :  { %v256_v53 = vsub.f32 %v194_v42, %v252_v52 }
 0x2a0   :  { %v258_v54 = vmul.f32 1.442695, %v256_v53 }
 0x2a2   :  { %1857 = vpow2.f32 %v258_v54 }
 0x2a5   :  { %v255_v55 = vpop.xlane.xlu1 %254 }
 0x2a6   :  { %v257_v56 = vsub.f32 %v243_v47, %v255_v55 }
 0x2a8   :  { %v260_v57 = vmul.f32 1.442695, %v257_v56 }
 0x2a9   :  { %v370_v62 = vpop.permute.xlu1 %369 }
 0x2aa   :  { %1859 = vpow2.f32 %v260_v57  ;;  %v375_v6 = vsel %vm153_vm3, %v370_v62, 0 }
 0x2ad   :  { %v420_v0 = vpop.permute.xlu1 %419 }
 0x2ae   :  { %v425_v15 = vsel %vm153_vm3, %v420_v0, 0 }
 0x2af   :  { %v1858_v58 = vpop.eup %1857 }
 0x2b0   :  { %v262_v59 = vsel %vm249_vm4, %v1858_v58, 0.0 }
 0x2b1   :  { %263 = vadd.xlane.f32.xlu0 %v262_v59 }
 0x2b7   :  { %v1860_v60 = vpop.eup %1859 }
 0x2b8   :  { %v265_v61 = vsel %vm249_vm4, %v1860_v60, 0.0 }
 0x2b9   :  { %266 = vadd.xlane.f32.xlu1 %v265_v61 }
 0x2ca   :  { %367 = vrot.lane.b32.xlu1 %v2048_v36, %s1933_s21 }
 0x2ce   :  { %417 = vrot.lane.b32.xlu1 %v2058_v40, %s1933_s21 }
 0x33a   :  { %v264_v63 = vpop.xlane.xlu0 %263 }
 0x33b   :  { %1861 = vrcp.f32 %v264_v63 }
 0x342   :  { %v267_v1 = vpop.xlane.xlu1 %266 }
 0x343   :  { %1863 = vrcp.f32 %v267_v1 }
 0x346   :  { %v368_v13 = vpop.permute.xlu1 %367 }
 0x348   :  { %v1862_v3 = vpop.eup %1861 }
 0x349   :  { %v269_v4 = vmul.f32 %v1862_v3, %v1858_v58 }
 0x34a   :  { %v418_v18 = vpop.permute.xlu1 %417 }
 0x34b   :  { %v272_v5 = vpack.c.bf16 %v269_v4, %v269_v4 }
 0x34d   :  { %1692 = vmatmul.mubr.msk.bf16.vlgmr.msra.gmra.mxu0 %vm249_vm4, %v272_v5 }
 0x34e   :  { %1702 = vmatpush3.bf16.xpose.msra.mxu0 %v375_v6  ;;  %1703 = vmatprep.mubr.msk.bf16.mxu0 %vm1930_vm1, %v1929_v12 }
 0x34f   :  { %1713 = vmatprep.subr.bf16.mxu0 %v1929_v12 }
 0x350   :  { %v1864_v7 = vpop.eup %1863 }
 0x351   :  { %v271_v8 = vmul.f32 %v1864_v7, %v1860_v60 }
 0x353   :  { %v273_v11 = vpack.c.bf16 %v271_v8, %v271_v8 }
 0x355   :  { %1698 = vmatmul.mubr.msk.bf16.vlgmr.msra.gmra.mxu1 %vm249_vm4, %v273_v11  ;;  %1704 = vmatmul.mubr.msk.bf16.vlgmr.msra.gmra.mxu0 %vm153_vm3, %v368_v13 }
 0x356   :  { %1708 = vmatpush3.bf16.xpose.msra.mxu1 %v425_v15  ;;  %1709 = vmatprep.mubr.msk.bf16.mxu1 %vm1930_vm1, %v1929_v12 }
 0x357   :  { %1719 = vmatprep.subr.bf16.mxu1 %v1929_v12  ;;  %1715 = vmatprep.mubr.msk.bf16.mxu0 %vm1930_vm1, %v1929_v12 }
 0x35d   :  { %1710 = vmatmul.mubr.msk.bf16.vlgmr.msra.gmra.mxu1 %vm153_vm3, %v418_v18 }
 0x35e   :  { %1721 = vmatprep.mubr.msk.bf16.mxu1 %vm1930_vm1, %v1929_v12 }
 0x40d   :  { %v2095_v19 = vpop.f32.mrf.mxu0 }
 0x40f   :  { %v1693_v20 = vpop.f32.mrf.mxu0 }
 0x411   :  { %v318_v21 = vpop.f32.mrf.mxu0 }
 0x413   :  { %v1694_v22 = vpop.f32.mrf.mxu0 }
 0x415   :  { %v2097_v24 = vpop.f32.mrf.mxu1  ;;  %v411_v25 = vpop.f32.mrf.mxu0 }
 0x416   :  { %v467_v27 = vsel %vm249_vm4, %v411_v25, -inf }
 0x417   :  { %468 = vmax.xlane.f32.xlu0 %v467_v27  ;;  %v1699_v28 = vpop.f32.mrf.mxu1  ;;  %v1705_v30 = vpop.f32.mrf.mxu0 }
 0x419   :  { %v364_v31 = vpop.f32.mrf.mxu1  ;;  %v414_v32 = vpop.f32.mrf.mxu0 }
 0x41b   :  { %v1700_v33 = vpop.f32.mrf.mxu1  ;;  %v1706_v34 = vpop.f32.mrf.mxu0 }
 0x41d   :  { %v461_v35 = vpop.f32.mrf.mxu1 }
 0x41e   :  { %v470_v37 = vsel %vm249_vm4, %v461_v35, -inf }
 0x41f   :  { %471 = vmax.xlane.f32.xlu1 %v470_v37  ;;  %v1711_v38 = vpop.f32.mrf.mxu1 }
 0x421   :  { %v464_v41 = vpop.f32.mrf.mxu1 }
 0x423   :  { %v1712_v42 = vpop.f32.mrf.mxu1 }
 0x42d   :  { %491 = vrot.lane.b32.xlu0 %v2037_v26, %s1933_s21 }
 0x430   :  { %639 = vrot.lane.b32.xlu1 %v2040_v29, %s1934_s22 }
 0x431   :  { %539 = vrot.lane.b32.xlu0 %v2056_v39, %s1933_s21 }
 0x4a0   :  { %v469_v43 = vpop.xlane.xlu0 %468 }
 0x4a1   :  { %v473_v44 = vsub.f32 %v411_v25, %v469_v43 }
 0x4a3   :  { %v475_v45 = vmul.f32 1.442695, %v473_v44 }
 0x4a4   :  { %v492_v46 = vpop.permute.xlu0 %491 }
 0x4a5   :  { %1865 = vpow2.f32 %v475_v45  ;;  %v497_v47 = vsel %vm277_vm2, %v492_v46, 0 }
 0x4a6   :  { %1714 = vmatpush3.bf16.msra.mxu0 %v497_v47 }
 0x4a7   :  { %1725 = vmatprep.subr.bf16.mxu0 %v1929_v12 }
 0x4a8   :  { %v540_v48 = vpop.permute.xlu0 %539  ;;  %v472_v49 = vpop.xlane.xlu1 %471 }
 0x4a9   :  { %v545_v50 = vsel %vm277_vm2, %v540_v48, 0  ;;  %v474_v51 = vsub.f32 %v461_v35, %v472_v49 }
 0x4aa   :  { %1720 = vmatpush3.bf16.msra.mxu1 %v545_v50 }
 0x4ab   :  { %v477_v52 = vmul.f32 1.442695, %v474_v51  ;;  %1731 = vmatprep.subr.bf16.mxu1 %v1929_v12 }
 0x4ac   :  { %v640_v3 = vpop.permute.xlu1 %639 }
 0x4ad   :  { %1867 = vpow2.f32 %v477_v52  ;;  %v645_v6 = vsel %vm153_vm3, %v640_v3, 0 }
 0x4b2   :  { %v1866_v53 = vpop.eup %1865 }
 0x4b3   :  { %v479_v54 = vsel %vm249_vm4, %v1866_v53, 0.0 }
 0x4b4   :  { %480 = vadd.xlane.f32.xlu0 %v479_v54 }
 0x4ba   :  { %v1868_v55 = vpop.eup %1867 }
 0x4bb   :  { %v482_v56 = vsel %vm249_vm4, %v1868_v55, 0.0 }
 0x4bc   :  { %483 = vadd.xlane.f32.xlu0 %v482_v56 }
 0x4d2   :  { %589 = vrot.lane.b32.xlu0 %v2035_v23, %s1934_s22 }
 0x4d6   :  { %587 = vrot.lane.b32.xlu0 %v2048_v36, %s1935_s23 }
 0x4da   :  { %637 = vrot.lane.b32.xlu0 %v2058_v40, %s1935_s23 }
 0x53d   :  { %v481_v57 = vpop.xlane.xlu0 %480 }
 0x53e   :  { %1869 = vrcp.f32 %v481_v57 }
 0x545   :  { %v484_v58 = vpop.xlane.xlu0 %483 }
 0x546   :  { %1871 = vrcp.f32 %v484_v58 }
 0x549   :  { %v590_v61 = vpop.permute.xlu0 %589 }
 0x54a   :  { %v595_v63 = vsel %vm153_vm3, %v590_v61, 0 }
 0x54b   :  { %v1870_v59 = vpop.eup %1869 }
 0x54c   :  { %v486_v60 = vmul.f32 %v1870_v59, %v1866_v53 }
 0x54d   :  { %v588_v5 = vpop.permute.xlu0 %587 }
 0x54e   :  { %v489_v62 = vpack.c.bf16 %v486_v60, %v486_v60 }
 0x550   :  { %1716 = vmatmul.mubr.msk.bf16.vlgmr.msra.gmra.mxu0 %vm249_vm4, %v489_v62 }
 0x551   :  { %1726 = vmatpush3.bf16.xpose.msra.mxu0 %v595_v63  ;;  %1727 = vmatprep.mubr.msk.bf16.mxu0 %vm1930_vm1, %v1929_v12  ;;  %v638_v7 = vpop.permute.xlu0 %637 }
 0x552   :  { %1737 = vmatprep.subr.bf16.mxu0 %v1929_v12 }
 0x553   :  { %v1872_v0 = vpop.eup %1871 }
 0x554   :  { %v488_v1 = vmul.f32 %v1872_v0, %v1868_v55 }
 0x556   :  { %v490_v4 = vpack.c.bf16 %v488_v1, %v488_v1 }
 0x558   :  { %1722 = vmatmul.mubr.msk.bf16.vlgmr.msra.gmra.mxu1 %vm249_vm4, %v490_v4  ;;  %1728 = vmatmul.mubr.msk.bf16.vlgmr.msra.gmra.mxu0 %vm153_vm3, %v588_v5 }
 0x559   :  { %1732 = vmatpush3.bf16.xpose.msra.mxu1 %v645_v6  ;;  %1733 = vmatprep.mubr.msk.bf16.mxu1 %vm1930_vm1, %v1929_v12 }
 0x55a   :  { %1743 = vmatprep.subr.bf16.mxu1 %v1929_v12  ;;  %1739 = vmatprep.mubr.msk.bf16.mxu0 %vm1930_vm1, %v1929_v12 }
 0x560   :  { %1734 = vmatmul.mubr.msk.bf16.vlgmr.msra.gmra.mxu1 %vm153_vm3, %v638_v7 }
 0x561   :  { %1745 = vmatprep.mubr.msk.bf16.mxu1 %vm1930_vm1, %v1929_v12 }
 0x610   :  { %v2135_v8 = vpop.f32.mrf.mxu0 }
 0x612   :  { %v1717_v11 = vpop.f32.mrf.mxu0 }
 0x614   :  { %v536_v13 = vpop.f32.mrf.mxu0 }
 0x616   :  { %v1718_v15 = vpop.f32.mrf.mxu0 }
 0x618   :  { %v2137_v18 = vpop.f32.mrf.mxu1  ;;  %v631_v20 = vpop.f32.mrf.mxu0 }
 0x619   :  { %v1798_v21 = vpack.i.bf16 %v2137_v18, %v2135_v8  ;;  %v687_v22 = vsel %vm249_vm4, %v631_v20, -inf }
 0x61a   :  { %688 = vmax.xlane.f32.xlu0 %v687_v22  ;;  %v1723_v25 = vpop.f32.mrf.mxu1  ;;  %v1729_v27 = vpop.f32.mrf.mxu0 }
 0x61c   :  { %v584_v28 = vpop.f32.mrf.mxu1  ;;  %v634_v30 = vpop.f32.mrf.mxu0 }
 0x61e   :  { %v1724_v31 = vpop.f32.mrf.mxu1  ;;  %v1730_v32 = vpop.f32.mrf.mxu0 }
 0x620   :  { %v681_v33 = vpop.f32.mrf.mxu1 }
 0x621   :  { %v690_v34 = vsel %vm249_vm4, %v681_v33, -inf }
 0x622   :  { %691 = vmax.xlane.f32.xlu1 %v690_v34  ;;  %v1735_v35 = vpop.f32.mrf.mxu1 }
 0x624   :  { %v684_v37 = vpop.f32.mrf.mxu1 }
 0x626   :  { %v1736_v38 = vpop.f32.mrf.mxu1 }
 0x630   :  { %711 = vrot.lane.b32.xlu0 %v2037_v26, %s1935_s23 }
 0x633   :  { %759 = vrot.lane.b32.xlu1 %v2056_v39, %s1935_s23 }
 0x637   :  { %809 = vrot.lane.b32.xlu1 %v2035_v23, %s1936_s24 }
 0x63b   :  { %807 = vrot.lane.b32.xlu1 %v2048_v36, %s1937_s25 }
 0x6a3   :  { %v689_v41 = vpop.xlane.xlu0 %688 }
 0x6a4   :  { %v693_v42 = vsub.f32 %v631_v20, %v689_v41 }
 0x6a6   :  { %v695_v43 = vmul.f32 1.442695, %v693_v42 }
 0x6a7   :  { %v712_v44 = vpop.permute.xlu0 %711 }
 0x6a8   :  { %1873 = vpow2.f32 %v695_v43  ;;  %v717_v45 = vsel %vm277_vm2, %v712_v44, 0 }
 0x6a9   :  { %1738 = vmatpush3.bf16.msra.mxu0 %v717_v45 }
 0x6aa   :  { %1749 = vmatprep.subr.bf16.mxu0 %v1929_v12 }
 0x6ab   :  { %v692_v46 = vpop.xlane.xlu1 %691 }
 0x6ac   :  { %v694_v47 = vsub.f32 %v681_v33, %v692_v46 }
 0x6ae   :  { %v697_v48 = vmul.f32 1.442695, %v694_v47 }
 0x6af   :  { %v760_v49 = vpop.permute.xlu1 %759 }
 0x6b0   :  { %1875 = vpow2.f32 %v697_v48  ;;  %v765_v23 = vsel %vm277_vm2, %v760_v49, 0 }
 0x6b1   :  { %1744 = vmatpush3.bf16.msra.mxu1 %v765_v23 }
 0x6b2   :  { %1755 = vmatprep.subr.bf16.mxu1 %v1929_v12 }
 0x6b3   :  { %v810_v57 = vpop.permute.xlu1 %809 }
 0x6b4   :  { %v815_v59 = vsel %vm153_vm3, %v810_v57, 0 }
 0x6b5   :  { %v1874_v36 = vpop.eup %1873 }
 0x6b6   :  { %v699_v50 = vsel %vm249_vm4, %v1874_v36, 0.0 }
 0x6b7   :  { %700 = vadd.xlane.f32.xlu0 %v699_v50  ;;  %v808_v62 = vpop.permute.xlu1 %807 }
 0x6bd   :  { %v1876_v51 = vpop.eup %1875 }
 0x6be   :  { %v702_v52 = vsel %vm249_vm4, %v1876_v51, 0.0 }
 0x6bf   :  { %703 = vadd.xlane.f32.xlu0 %v702_v52 }
 0x6d5   :  { %859 = vrot.lane.b32.xlu0 %v2040_v29, %s1936_s24 }
 0x6d9   :  { %857 = vrot.lane.b32.xlu0 %v2058_v40, %s1937_s25 }
 0x740   :  { %v701_v53 = vpop.xlane.xlu0 %700 }
 0x741   :  { %1877 = vrcp.f32 %v701_v53  ;;  %v1825_v53 = vld [vmem:[%s2332_s2 + $0x18] sm:$0xff]  }
 0x748   :  { %v704_v54 = vpop.xlane.xlu0 %703 }
 0x749   :  { %1879 = vrcp.f32 %v704_v54  ;;  %v1826_v54 = vld [vmem:[%s2332_s2 + $0x10] sm:$0xff]  }
 0x74c   :  { %v860_v60 = vpop.permute.xlu0 %859 }
 0x74d   :  { %v865_v63 = vsel %vm153_vm3, %v860_v60, 0 }
 0x74e   :  { %v1878_v55 = vpop.eup %1877 }
 0x74f   :  { %v706_v56 = vmul.f32 %v1878_v55, %v1874_v36  ;;  %v1827_v55 = vld [vmem:[%s2332_s2 + $0x8] sm:$0xff]  }
 0x750   :  { %v858_v0 = vpop.permute.xlu0 %857 }
 0x751   :  { %v709_v58 = vpack.c.bf16 %v706_v56, %v706_v56 }
 0x753   :  { %1740 = vmatmul.mubr.msk.bf16.vlgmr.msra.gmra.mxu0 %vm249_vm4, %v709_v58 }
 0x754   :  { %1750 = vmatpush3.bf16.xpose.msra.mxu0 %v815_v59  ;;  %1751 = vmatprep.mubr.msk.bf16.mxu0 %vm1930_vm1, %v1929_v12 }
 0x755   :  { %1761 = vmatprep.subr.bf16.mxu0 %v1929_v12 }
 0x756   :  { %v1880_v29 = vpop.eup %1879 }
 0x757   :  { %v708_v40 = vmul.f32 %v1880_v29, %v1876_v51 }
 0x759   :  { %v710_v61 = vpack.c.bf16 %v708_v40, %v708_v40 }
 0x75b   :  { %1746 = vmatmul.mubr.msk.bf16.vlgmr.msra.gmra.mxu1 %vm249_vm4, %v710_v61  ;;  %1752 = vmatmul.mubr.msk.bf16.vlgmr.msra.gmra.mxu0 %vm153_vm3, %v808_v62 }
 0x75c   :  { %1756 = vmatpush3.bf16.xpose.msra.mxu1 %v865_v63  ;;  %1757 = vmatprep.mubr.msk.bf16.mxu1 %vm1930_vm1, %v1929_v12 }
 0x75d   :  { %1767 = vmatprep.subr.bf16.mxu1 %v1929_v12  ;;  %1763 = vmatprep.mubr.msk.bf16.mxu0 %vm1930_vm1, %v1929_v12 }
 0x763   :  { %1758 = vmatmul.mubr.msk.bf16.vlgmr.msra.gmra.mxu1 %vm153_vm3, %v858_v0 }
 0x764   :  { %1769 = vmatprep.mubr.msk.bf16.mxu1 %vm1930_vm1, %v1929_v12 }
 0x813   :  { %v753_v1 = vpop.f32.mrf.mxu0 }
 0x815   :  { %v1741_v3 = vpop.f32.mrf.mxu0 }
 0x817   :  { %v756_v4 = vpop.f32.mrf.mxu0 }
 0x819   :  { %v1742_v5 = vpop.f32.mrf.mxu0 }
 0x81b   :  { %v801_v6 = vpop.f32.mrf.mxu1  ;;  %v851_v7 = vpop.f32.mrf.mxu0 }
 0x81c   :  { %v1803_v11 = vpack.i.bf16 %v801_v6, %v753_v1  ;;  %v907_v13 = vsel %vm249_vm4, %v851_v7, -inf }
 0x81d   :  { %908 = vmax.xlane.f32.xlu1 %v907_v13  ;;  %v1747_v15 = vpop.f32.mrf.mxu1  ;;  %v1753_v20 = vpop.f32.mrf.mxu0 }
 0x81f   :  { %v804_v22 = vpop.f32.mrf.mxu1  ;;  %v854_v25 = vpop.f32.mrf.mxu0 }
 0x821   :  { %v1748_v27 = vpop.f32.mrf.mxu1  ;;  %v1754_v28 = vpop.f32.mrf.mxu0 }
 0x822   :  { %v1070_v28 = vsub.s32 1, %v2016_v14 }
 0x823   :  { %v901_v30 = vpop.f32.mrf.mxu1 }
 0x824   :  { %v910_v31 = vsel %vm249_vm4, %v901_v30, -inf }
 0x825   :  { %911 = vmax.xlane.f32.xlu0 %v910_v31  ;;  %v1759_v32 = vpop.f32.mrf.mxu1 }
 0x827   :  { %v904_v33 = vpop.f32.mrf.mxu1 }
 0x829   :  { %v1760_v34 = vpop.f32.mrf.mxu1 }
 0x8a6   :  { %v909_v35 = vpop.xlane.xlu1 %908 }
 0x8a7   :  { %v913_v37 = vsub.f32 %v851_v7, %v909_v35 }
 0x8a9   :  { %v915_v38 = vmul.f32 1.442695, %v913_v37 }
 0x8ab   :  { %1881 = vpow2.f32 %v915_v38 }
 0x8ae   :  { %v912_v41 = vpop.xlane.xlu0 %911 }
 0x8af   :  { %v914_v42 = vsub.f32 %v901_v30, %v912_v41 }
 0x8b1   :  { %v917_v43 = vmul.f32 1.442695, %v914_v42 }
 0x8b3   :  { %1883 = vpow2.f32 %v917_v43 }
 0x8b8   :  { %v1882_v44 = vpop.eup %1881 }
 0x8b9   :  { %v919_v45 = vsel %vm249_vm4, %v1882_v44, 0.0 }
 0x8ba   :  { %920 = vadd.xlane.f32.xlu0 %v919_v45 }
 0x8c0   :  { %v1884_v46 = vpop.eup %1883 }
 0x8c1   :  { %v922_v47 = vsel %vm249_vm4, %v1884_v46, 0.0 }
 0x8c2   :  { %923 = vadd.xlane.f32.xlu1 %v922_v47 }
 0x8d0   :  { %931 = vrot.lane.b32.xlu0 %v2037_v26, %s1937_s25 }
 0x8d3   :  { %979 = vrot.lane.b32.xlu1 %v2056_v39, %s1937_s25 }
 0x8d4   :  { %1804 = vrot.lane.b32.xlu0 %v1803_v11, %s1934_s22 }
 0x8d7   :  { %1799 = vrot.lane.b32.xlu1 %v1798_v21, %s1936_s24 }
 0x943   :  { %v921_v48 = vpop.xlane.xlu0 %920 }
 0x944   :  { %1885 = vrcp.f32 %v921_v48 }
 0x947   :  { %v932_v49 = vpop.permute.xlu0 %931 }
 0x948   :  { %v937_v23 = vsel %vm277_vm2, %v932_v49, 0 }
 0x949   :  { %1762 = vmatpush3.bf16.msra.mxu0 %v937_v23 }
 0x94a   :  { %1773 = vmatprep.subr.bf16.mxu0 %v1929_v12 }
 0x94b   :  { %v924_v36 = vpop.xlane.xlu1 %923 }
 0x94c   :  { %1887 = vrcp.f32 %v924_v36  ;;  %v1829_v36 = vld [vmem:[%s2333_s3 + $0x30] ss:$8 sps:$4 sm:$0xff]  }
 0x94f   :  { %v980_v26 = vpop.permute.xlu1 %979 }
 0x950   :  { %v985_v39 = vsel %vm277_vm2, %v980_v26, 0  ;;  %v1834_v26 = vld [vmem:[%s2333_s3 + $0x24] ss:$8 sps:$4 sm:$0xff]  }
 0x951   :  { %v1886_v50 = vpop.eup %1885  ;;  %1768 = vmatpush3.bf16.msra.mxu1 %v985_v39  ;;  %v1832_v39 = vld [vmem:[%s2333_s3 + $0x20] ss:$8 sps:$4 sm:$0xff]  }
 0x952   :  { %v926_v51 = vmul.f32 %v1886_v50, %v1882_v44  ;;  %v1837_v50 = vld [vmem:[%s2333_s3 + $0x14] ss:$8 sps:$4 sm:$0xff]  }
 0x953   :  { %v1800_v63 = vpop.permute.xlu1 %1799 }
 0x954   :  { %v929_v52 = vpack.c.bf16 %v926_v51, %v926_v51  ;;  %v1802_v0 = vunpack.i.h.bf16 %v1800_v63  ;;  %v1801_v1 = vunpack.i.l.bf16 %v1800_v63  ;;  %v1835_v51 = vld [vmem:[%s2333_s3 + $0x10] ss:$8 sps:$4 sm:$0xff]  }
 0x956   :  { %1764 = vmatmul.mubr.msk.bf16.vlgmr.msra.gmra.mxu0 %vm249_vm4, %v929_v52  ;;  %v1052_v3 = vsel %vm153_vm3, %v2097_v24, %v1802_v0  ;;  %v1051_v4 = vsel %vm153_vm3, %v2095_v19, %v1801_v1  ;;  %v1071_v24 = vrot.slane %v2022_v16, %v1070_v28  ;;  %v1840_v52 = vld [vmem:[%s2333_s3 + $0x4] ss:$8 sps:$4 sm:$0xff]  }
 0x957   :  { %1781 = vmatprep.mubr.msk.bf16.mxu0 %vm1930_vm1, %v1929_v12  ;;  %1774 = vmatpush3.bf16.msra.mxu0 %v1825_v53  ;;  %v1853_v28 = vld [vmem:[%s2334_s4 + $0x48] sm:$0xff]  }
 0x958   :  { %1775 = vmatprep.subr.bf16.mxu0 %v1929_v12 }
 0x959   :  { %v1888_v8 = vpop.eup %1887 }
 0x95a   :  { %v928_v18 = vmul.f32 %v1888_v8, %v1884_v46  ;;  %v1838_v8 = vld [vmem:[%s2333_s3] ss:$8 sps:$4 sm:$0xff]  }
 0x95b   :  { %1776 = vmatpush3.bf16.msra.mxu0 %v1826_v54 }
 0x95c   :  { %v930_v21 = vpack.c.bf16 %v928_v18, %v928_v18  ;;  %1777 = vmatprep.subr.bf16.mxu0 %v1929_v12 }
 0x95e   :  { %1770 = vmatmul.mubr.msk.bf16.vlgmr.msra.gmra.mxu1 %vm249_vm4, %v930_v21 }
 0x95f   :  { %1273 = vmatprep.mubr.bf16.mxu1 %v1928_v2  ;;  %1778 = vmatpush3.bf16.msra.mxu0 %v1827_v55  ;;  %v1828_v2 = vld [vmem:[%s2332_s2] sm:$0xff]  }
 0x960   :  { %1779 = vmatprep.subr.bf16.mxu0 %v1929_v12  ;;  %v1805_v12 = vpop.permute.xlu0 %1804 }
 0x961   :  { %v1807_v5 = vunpack.i.h.bf16 %v1805_v12  ;;  %v1806_v6 = vunpack.i.l.bf16 %v1805_v12 }
 0x963   :  { %1780 = vmatpush3.bf16.msra.mxu0 %v1828_v2  ;;  %v1054_v15 = vsel %vm1053_vm5, %v1051_v4, %v1806_v6  ;;  %v1055_v20 = vsel %vm1053_vm5, %v1052_v3, %v1807_v5  ;;  %v1841_v3 = vld [vmem:[%s2334_s4 + $0x78] sm:$0xff]   ;;  %v1843_v5 = vld [vmem:[%s2334_s4 + $0x70] sm:$0xff]  }
 0x964   :  { %v1842_v4 = vld [vmem:[%s2334_s4 + $0x38] sm:$0xff]   ;;  %1655 = vmatprep.subr.bf16.mxu0 %v1841_v3  ;;  %v1844_v6 = vld [vmem:[%s2334_s4 + $0x30] sm:$0xff]  }
 0xa16   :  { %v973_v56 = vpop.f32.mrf.mxu0 }
 0xa18   :  { %v1765_v57 = vpop.f32.mrf.mxu0 }
 0xa1a   :  { %v976_v58 = vpop.f32.mrf.mxu0 }
 0xa1c   :  { %v1766_v59 = vpop.f32.mrf.mxu0 }
 0xa1e   :  { %v1021_v29 = vpop.f32.mrf.mxu1 }
 0xa1f   :  { %v1808_v40 = vpack.i.bf16 %v1021_v29, %v973_v56  ;;  %v1171_v56 = vsub.s32 2, %v2016_v14  ;;  %v1177_v29 = vsub.s32 3, %v2016_v14 }
 0xa20   :  { %v1771_v60 = vpop.f32.mrf.mxu1 }
 0xa21   :  { %1809 = vrot.lane.b32.xlu1 %v1808_v40, %s1932_s20  ;;  %v1172_v59 = vrot.slane %v2022_v16, %v1171_v56 }
 0xa22   :  { %v1024_v61 = vpop.f32.mrf.mxu1 }
 0xa24   :  { %v1772_v62 = vpop.f32.mrf.mxu1 }
 0xa25   :  { %v1178_v62 = vrot.slane %v2022_v16, %v1177_v29 }
 0xa93   :  { %v1810_v7 = vpop.permute.xlu1 %1809 }
 0xa94   :  { %v1812_v11 = vunpack.i.h.bf16 %v1810_v7  ;;  %v1811_v13 = vunpack.i.l.bf16 %v1810_v7  ;;  %v1845_v7 = vld [vmem:[%s2334_s4 + $0x68] sm:$0xff]  }
 0xa96   :  { %v1058_v22 = vsel %vm1056_vm6, %v1055_v20, %v1812_v11  ;;  %v1057_v25 = vsel %vm1056_vm6, %v1054_v15, %v1811_v13  ;;  %v1846_v11 = vld [vmem:[%s2334_s4 + $0x28] sm:$0xff]   ;;  %v1847_v13 = vld [vmem:[%s2334_s4 + $0x60] sm:$0xff]   ;;  %v1849_v20 = vld [vmem:[%s2334_s4 + $0x58] sm:$0xff]  }
 0xa97   :  { %v1059_v27 = vpack.c.bf16 %v1058_v22, %v1057_v25  ;;  %v1848_v15 = vld [vmem:[%s2334_s4 + $0x20] sm:$0xff]   ;;  %v1850_v22 = vld [vmem:[%s2334_s4 + $0x18] sm:$0xff]   ;;  %v1851_v25 = vld [vmem:[%s2334_s4 + $0x50] sm:$0xff]  }
 0xa99   :  { %1782 = vmatmul.mubr.msk.bf16.vlgmr.msra.gmra.mxu0 %vm87_vm0, %v1059_v27  ;;  %v1852_v27 = vld [vmem:[%s2334_s4 + $0x10] sm:$0xff]  }
 0xa9a   :  { %1656 = vmatpush3.bf16.msra.mxu0 %v1842_v4 }
 0xa9b   :  { %1657 = vmatprep.subr.bf16.mxu0 %v1843_v5 }
 0xa9e   :  { %1658 = vmatpush3.bf16.msra.mxu0 %v1844_v6 }
 0xa9f   :  { %1659 = vmatprep.subr.bf16.mxu0 %v1845_v7  ;;  %v1356_v7 = vsub.s32 5, %v2016_v14 }
 0xaa2   :  { %1660 = vmatpush3.bf16.msra.mxu0 %v1846_v11 }
 0xaa3   :  { %1661 = vmatprep.subr.bf16.mxu0 %v1847_v13  ;;  %v1905_v13 = vld [vmem:[%s2335_s5] sm:$0xff]  ;;  %s1938_s5 = smov [#allocation2]  }
 0xaa4   :  { %s1542_s27 = sshll.u32 %s1938_s5, 4  ;;  %s1543_s27 = int_to_ptr.vmem [resolvable:$true] %s1542_s27 }
 0xaa5   :  { %s1906_s28 = scalar_lea.vmem %s1543_s27, 256  ;;  %p1911_p1 = scmp.lt.s32.totalorder %s1543_s27, %s1543_s27 }
 0xaa6   :  { %1662 = vmatpush3.bf16.msra.mxu0 %v1848_v15  ;;  %v1357_v15 = vrot.slane %v1905_v13, %v1356_v7  ;;  %p1907_p0 = scmp.ne.s32.totalorder %s1543_s27, %s1906_s28  ;;  %p1912_p2 = scmp.lt.s32.totalorder %s1906_s28, %s1906_s28 }
 0xaa7   :  { %1663 = vmatprep.subr.bf16.mxu0 %v1849_v20 }
 0xaa8   :  { %p1913_p3 = por %p1912_p2, %p1911_p1 }
 0xaaa   :  { %1664 = vmatpush3.bf16.msra.mxu0 %v1850_v22  ;;  %p1914_p4 = pnand %p1913_p3, %p1907_p0 }
 0xaab   :  { %1665 = vmatprep.subr.bf16.mxu0 %v1851_v25 }
 0xaae   :  { %1666 = vmatpush3.bf16.msra.mxu0 %v1852_v27 }
 0xaaf   :  { %1667 = vmatprep.subr.bf16.mxu0 %v1853_v28 }
 0xb59   :  { %v1133_v30 = vpop.f32.mrf.mxu0 }
 0xb5a   :  { %v1134_v19 = vadd.f32 %v1133_v30, %v1071_v24  ;;  %v1855_v30 = vld [vmem:[%s2334_s4 + $0x40] sm:$0xff]  }
 0xb5b   :  { %v1783_v31 = vpop.f32.mrf.mxu0 }
 0xb5c   :  { %v1140_v32 = vadd.f32 %v1134_v19, %v2004_v9  ;;  %v1856_v19 = vld [vmem:[%s2334_s4] sm:$0xff]   ;;  %v1192_v31 = vsub.s32 4, %v2016_v14 }
 0xb5d   :  { %v1136_v33 = vpop.f32.mrf.mxu0 }
 0xb5e   :  { %v1137_v34 = vadd.f32 %v1136_v33, %v1071_v24  ;;  %v1142_v35 = vsel %vm87_vm0, %v1140_v32, 0.0  ;;  %v1854_v24 = vld [vmem:[%s2334_s4 + $0x8] sm:$0xff]   ;;  %v1197_v33 = vrot.slane %v2027_v17, %v1192_v31 }
 0xb5f   :  { %1143 = vadd.xlane.f32.xlu0 %v1142_v35  ;;  %v1784_v37 = vpop.f32.mrf.mxu0  ;;  %1668 = vmatpush3.bf16.msra.mxu0 %v1854_v24 }
 0xb60   :  { %v1141_v38 = vadd.f32 %v1137_v34, %v2009_v10  ;;  %v1831_v10 = vld [vmem:[%s2333_s3 + $0x34] ss:$8 sps:$4 sm:$0xff]   ;;  %1669 = vmatprep.subr.bf16.mxu0 %v1855_v30 }
 0xb61   :  { %1249 = vmatprep.subr.bf16.mxu1 %v1831_v10 }
 0xb62   :  { %v1145_v41 = vsel %vm87_vm0, %v1141_v38, 0.0  ;;  %1250 = vmatpush1.bf16.msra.mxu1 %v1829_v36 }
 0xb63   :  { %1146 = vadd.xlane.f32.xlu1 %v1145_v41  ;;  %1251 = vmatprep.subr.bf16.mxu1 %v1834_v26 }
 0xb64   :  { %1670 = vmatpush3.bf16.msra.mxu0 %v1856_v19 }
 0xb66   :  { %1252 = vmatpush1.bf16.msra.mxu1 %v1832_v39 }
 0xb67   :  { %1253 = vmatprep.subr.bf16.mxu1 %v1837_v50 }
 0xb6a   :  { %1254 = vmatpush1.bf16.msra.mxu1 %v1835_v51 }
 0xb6b   :  { %1255 = vmatprep.subr.bf16.mxu1 %v1840_v52 }
 0xb6e   :  { %1256 = vmatpush1.bf16.msra.mxu1 %v1838_v8 }
 0xbe8   :  { %v1144_v42 = vpop.xlane.xlu0 %1143 }
 0xbe9   :  { %v1149_v43 = vmul.f32 0.015625, %v1144_v42 }
 0xbeb   :  { %v1151_v44 = vsub.f32 %v1140_v32, %v1149_v43  ;;  %v1193_v32 = vrot.slane %v2022_v16, %v1192_v31 }
 0xbec   :  { %v1147_v45 = vpop.xlane.xlu1 %1146 }
 0xbed   :  { %v1150_v46 = vmul.f32 0.015625, %v1147_v45  ;;  %v1153_v47 = vmul.f32 %v1151_v44, %v1151_v44 }
 0xbef   :  { %v1152_v48 = vsub.f32 %v1141_v38, %v1150_v46  ;;  %v1155_v9 = vsel %vm87_vm0, %v1153_v47, 0.0 }
 0xbf0   :  { %1156 = vadd.xlane.f32.xlu0 %v1155_v9 }
 0xbf1   :  { %v1154_v49 = vmul.f32 %v1152_v48, %v1152_v48 }
 0xbf3   :  { %v1158_v23 = vsel %vm87_vm0, %v1154_v49, 0.0 }
 0xbf4   :  { %1159 = vadd.xlane.f32.xlu0 %v1158_v23 }
 0xc79   :  { %v1157_v18 = vpop.xlane.xlu0 %1156 }
 0xc7a   :  { %v1161_v21 = vmul.f32 0.015625, %v1157_v18 }
 0xc7c   :  { %v1163_v53 = vadd.f32 1e-05, %v1161_v21 }
 0xc7d   :  { %v1160_v54 = vpop.xlane.xlu0 %1159 }
 0xc7e   :  { %1889 = vrsqrt.f32 %v1163_v53  ;;  %v1162_v55 = vmul.f32 0.015625, %v1160_v54 }
 0xc80   :  { %v1164_v2 = vadd.f32 1e-05, %v1162_v55 }
 0xc82   :  { %1891 = vrsqrt.f32 %v1164_v2 }
 0xc8b   :  { %v1890_v57 = vpop.eup %1889 }
 0xc8c   :  { %v1167_v58 = vmul.f32 %v1890_v57, %v1151_v44 }
 0xc8e   :  { %v1173_v61 = vmul.f32 %v1172_v59, %v1167_v58 }
 0xc8f   :  { %v1892_v40 = vpop.eup %1891 }
 0xc90   :  { %v1168_v60 = vmul.f32 %v1892_v40, %v1152_v48  ;;  %v2255_v0 = vadd.f32 %v1178_v62, %v1173_v61 }
 0xc92   :  { %v1174_v63 = vmul.f32 %v1172_v59, %v1168_v60 }
 0xc94   :  { %v2257_v1 = vadd.f32 %v1178_v62, %v1174_v63 }
 0xc96   :  { %v1181_v12 = vpack.c.bf16 %v2257_v1, %v2255_v0 }
 0xc98   :  { %1597 = vmatmul.mubr.msk.bf16.vlgmr.msra.gmra.mxu1 %vm87_vm0, %v1181_v12 }
 0xd58   :  { %v1275_v34 = vpop.f32.mrf.mxu1 }
 0xd59   :  { %v1276_v35 = vadd.f32 %v1275_v34, %v1193_v32 }
 0xd5a   :  { %v1277_v37 = vpop.f32.mrf.mxu1 }
 0xd5b   :  { %v1288_v38 = vmul.f32 0.044715, %v1276_v35  ;;  %v1278_v41 = vadd.f32 %v1277_v37, %v1197_v33  ;;  %v1284_v62 = vmul.f32 0.5, %v1276_v35 }
 0xd5c   :  { %v1279_v42 = vpop.f32.mrf.mxu1 }
 0xd5d   :  { %v1292_v43 = vmul.f32 %v1288_v38, %v1276_v35  ;;  %v1289_v44 = vmul.f32 0.044715, %v1278_v41  ;;  %v1280_v45 = vadd.f32 %v1279_v42, %v1193_v32  ;;  %v1285_v40 = vmul.f32 0.5, %v1278_v41 }
 0xd5e   :  { %v1281_v46 = vpop.f32.mrf.mxu1 }
 0xd5f   :  { %v1296_v47 = vmul.f32 %v1292_v43, %v1276_v35  ;;  %v1293_v48 = vmul.f32 %v1289_v44, %v1278_v41  ;;  %v1290_v9 = vmul.f32 0.044715, %v1280_v45  ;;  %v1282_v49 = vadd.f32 %v1281_v46, %v1197_v33 }
 0xd60   :  { %v1286_v59 = vmul.f32 0.5, %v1280_v45 }
 0xd61   :  { %v1300_v23 = vadd.f32 %v1296_v47, %v1276_v35  ;;  %v1297_v10 = vmul.f32 %v1293_v48, %v1278_v41  ;;  %v1294_v36 = vmul.f32 %v1290_v9, %v1280_v45  ;;  %v1291_v16 = vmul.f32 0.044715, %v1282_v49 }
 0xd62   :  { %v1287_v60 = vmul.f32 0.5, %v1282_v49 }
 0xd63   :  { %v1298_v26 = vmul.f32 %v1294_v36, %v1280_v45  ;;  %v1295_v17 = vmul.f32 %v1291_v16, %v1282_v49  ;;  %v1301_v39 = vadd.f32 %v1297_v10, %v1278_v41  ;;  %v1304_v50 = vmul.f32 0.7978846, %v1300_v23 }
 0xd64   :  { %v1525_v23 = vsub.s32 6, %v2016_v14  ;;  %v1531_v10 = vsub.s32 7, %v2016_v14 }
 0xd65   :  { %v1302_v51 = vadd.f32 %v1298_v26, %v1280_v45  ;;  %v1299_v52 = vmul.f32 %v1295_v17, %v1282_v49  ;;  %v1305_v8 = vmul.f32 0.7978846, %v1301_v39 }
 0xd66   :  { %v1526_v36 = vrot.slane %v1905_v13, %v1525_v23  ;;  %v1532_v17 = vrot.slane %v1905_v13, %v1531_v10 }
 0xd67   :  { %v1306_v18 = vmul.f32 0.7978846, %v1302_v51  ;;  %v1303_v21 = vadd.f32 %v1299_v52, %v1282_v49  ;;  %1893 = vtanh.f32 %v1305_v8 }
 0xd68   :  { %1895 = vtanh.f32 %v1304_v50 }
 0xd69   :  { %1897 = vtanh.f32 %v1306_v18  ;;  %v1307_v53 = vmul.f32 0.7978846, %v1303_v21 }
 0xd6b   :  { %1899 = vtanh.f32 %v1307_v53 }
 0xd74   :  { %v1894_v54 = vpop.eup %1893 }
 0xd75   :  { %v1896_v55 = vpop.eup %1895  ;;  %v1313_v56 = vadd.f32 1.0, %v1894_v54 }
 0xd76   :  { %v1898_v2 = vpop.eup %1897  ;;  %v1312_v29 = vadd.f32 1.0, %v1896_v55 }
 0xd77   :  { %v1314_v57 = vadd.f32 1.0, %v1898_v2  ;;  %v1317_v12 = vmul.f32 %v1313_v56, %v1285_v40 }
 0xd78   :  { %v1900_v58 = vpop.eup %1899  ;;  %v1316_v4 = vmul.f32 %v1312_v29, %v1284_v62 }
 0xd79   :  { %v1315_v61 = vadd.f32 1.0, %v1900_v58  ;;  %v1318_v63 = vmul.f32 %v1314_v57, %v1286_v59 }
 0xd7b   :  { %v1319_v3 = vmul.f32 %v1315_v61, %v1287_v60  ;;  %v1320_v6 = vpack.c.bf16 %v1318_v63, %v1316_v4 }
 0xd7d   :  { %v1321_v5 = vpack.c.bf16 %v1319_v3, %v1317_v12 }
 0xd7f   :  { %1486 = vmatprep.mubr.bf16.mxu0 %v1321_v5 }
 0xd80   :  { %1487 = vmatmul.mubr.bf16.vlgmr.msra.gmra.mxu0 %v1320_v6 }
 0xe40   :  { %v1671_v11 = vpop.f32.mrf.mxu0 }
 0xe42   :  { %v1672_v20 = vpop.f32.mrf.mxu0 }
 0xe43   :  { %v1673_v22 = vadd.f32 %v1672_v20, %v1671_v11 }
 0xe44   :  { %v1674_v25 = vpop.f32.mrf.mxu0 }
 0xe45   :  { %v1489_v27 = vadd.f32 %v1673_v22, %v1357_v15 }
 0xe46   :  { %v1675_v28 = vpop.f32.mrf.mxu0 }
 0xe47   :  { %v1676_v24 = vadd.f32 %v1675_v28, %v1674_v25  ;;  %v1495_v30 = vadd.f32 %v1489_v27, %v2255_v0 }
 0xe49   :  { %v1492_v19 = vadd.f32 %v1676_v24, %v1357_v15  ;;  %v1497_v31 = vsel %vm87_vm0, %v1495_v30, 0.0 }
 0xe4a   :  { %1498 = vadd.xlane.f32.xlu1 %v1497_v31 }
 0xe4b   :  { %v1496_v32 = vadd.f32 %v1492_v19, %v2257_v1 }
 0xe4d   :  { %v1500_v33 = vsel %vm87_vm0, %v1496_v32, 0.0 }
 0xe4e   :  { %1501 = vadd.xlane.f32.xlu0 %v1500_v33 }
 0xed3   :  { %v1499_v34 = vpop.xlane.xlu1 %1498 }
 0xed4   :  { %v1503_v35 = vmul.f32 0.015625, %v1499_v34 }
 0xed6   :  { %v1505_v37 = vsub.f32 %v1495_v30, %v1503_v35 }
 0xed7   :  { %v1502_v38 = vpop.xlane.xlu0 %1501 }
 0xed8   :  { %v1504_v41 = vmul.f32 0.015625, %v1502_v38  ;;  %v1507_v42 = vmul.f32 %v1505_v37, %v1505_v37 }
 0xeda   :  { %v1506_v43 = vsub.f32 %v1496_v32, %v1504_v41  ;;  %v1509_v44 = vsel %vm87_vm0, %v1507_v42, 0.0 }
 0xedb   :  { %1510 = vadd.xlane.f32.xlu1 %v1509_v44 }
 0xedc   :  { %v1508_v0 = vmul.f32 %v1506_v43, %v1506_v43 }
 0xede   :  { %v1512_v45 = vsel %vm87_vm0, %v1508_v0, 0.0 }
 0xedf   :  { %1513 = vadd.xlane.f32.xlu0 %v1512_v45 }
 0xf64   :  { %v1511_v46 = vpop.xlane.xlu1 %1510 }
 0xf65   :  { %v1515_v47 = vmul.f32 0.015625, %v1511_v46 }
 0xf67   :  { %v1517_v1 = vadd.f32 1e-05, %v1515_v47 }
 0xf68   :  { %v1514_v48 = vpop.xlane.xlu0 %1513 }
 0xf69   :  { %1901 = vrsqrt.f32 %v1517_v1  ;;  %v1516_v9 = vmul.f32 0.015625, %v1514_v48 }
 0xf6b   :  { %v1518_v49 = vadd.f32 1e-05, %v1516_v9 }
 0xf6d   :  { %1903 = vrsqrt.f32 %v1518_v49 }
 0xf76   :  { %v1902_v16 = vpop.eup %1901 }
 0xf77   :  { %v1521_v26 = vmul.f32 %v1902_v16, %v1505_v37 }
 0xf79   :  { %v1527_v39 = vmul.f32 %v1526_v36, %v1521_v26 }
 0xf7a   :  { %v1904_v50 = vpop.eup %1903 }
 0xf7b   :  { %v1522_v51 = vmul.f32 %v1904_v50, %v1506_v43  ;;  %v1533_v52 = vadd.f32 %v1532_v17, %v1527_v39 }
 0xf7d   :  { %v1528_v8 = vmul.f32 %v1526_v36, %v1522_v51  ;;  %1535 = vst.msk [vmem:[#allocation2] sm:$0xff] %vm87_vm0, %v1533_v52 }
 0xf7f   :  { %v1534_v18 = vadd.f32 %v1532_v17, %v1528_v8 }
 0xf81   :  { %1536 = vst.msk [vmem:[#allocation2 + $0x8] sm:$0xff] %vm87_vm0, %v1534_v18 }
 0xf82   :  { %1917 = shalt.err (!%p1914_p4)
}
 0xf83   :  { %s1939_s29 = smov 128   ;;  %s1940_s30 = smov 8  }
 0xf84   :  { %1548 = dma.vmem_to_hbm [thread:$0]  %s1543_s27, 256, %s2336_s6, [#allocation3], %s1939_s29, %s1939_s29, %s1940_s30  }
 0xf85   :  { %1926 = dma.done.wait [#allocation3], 256  }
 0xf86   :  { %1927 = vsyncadd [#allocation3], 4294967040 }
 0xf87   :  { %1552 = vsyncpa [#allocation3], 1 }

</bundles_post_ra>
